<compile_context>
chip_gen: v7x
topology: tpu7x:2x2x1
jax: 0.10.0
libtpu: 0.0.40
codegen_flags: <defaults>
</compile_context>

<pallas_src>
import functools
import math

import jax
import jax.numpy as jnp
from jax.experimental import pallas as pl
from jax.experimental.pallas import tpu as pltpu


def _round_up(x, m):
    return ((x + m - 1) // m) * m


# ----------------------------- Pallas kernel --------------------------------
def _diffusion_mlp_kernel(
    time_dim, hidden_dim, out_pad,     # static (bound via functools.partial)
    x_ref,        # (TB, T+S+A) bf16   [sin/cos emb | state | action]
    bias_ref,     # (8, C)      f32    rows 0..3 = bt, b1, b2, b3
    wt_ref,       # (T, H)      bf16   time_mlp weight
    w1sa_ref,     # (S+A, H)    bf16   net[0] weight (state+action rows)
    w1t_ref,      # (H, H)      bf16   net[0] weight (time-emb rows)
    w2_ref,       # (H, H)      bf16   net[2] weight
    w3_ref,       # (H, OUT_PAD)bf16   net[4] weight (zero-padded columns)
    out_ref,      # (TB, OUT_PAD) bf16
):
    f32, bf16 = jnp.float32, jnp.bfloat16

    x = x_ref[...]                               # one vld of the streamed tile
    emb = x[:, :time_dim]                        # (TB, T)   bf16
    sa = x[:, time_dim:]                         # (TB, S+A) bf16

    bt = bias_ref[0:1, :hidden_dim]              # (1, H) f32
    b1 = bias_ref[1:2, :hidden_dim]
    b2 = bias_ref[2:3, :hidden_dim]
    b3 = bias_ref[3:4, :out_pad]                 # (1, OUT_PAD) f32

    # time_mlp: Linear(emb) + ReLU  (single K=time_dim matmul, f32 accumulate).
    temb = jnp.dot(emb, wt_ref[...], preferred_element_type=f32)
    temb = jnp.maximum(temb + bt, 0.0)

    # net[0]: Linear(concat([state, action, temb])) + ReLU as a split matmul.
    h1 = jnp.dot(sa, w1sa_ref[...], preferred_element_type=f32)
    h1 = h1 + jnp.dot(temb.astype(bf16), w1t_ref[...], preferred_element_type=f32)
    h1 = jnp.maximum(h1 + b1, 0.0)

    # net[2]: Linear + Tanh (tanh in f32 on the EUP).
    h2 = jnp.tanh(
        jnp.dot(h1.astype(bf16), w2_ref[...], preferred_element_type=f32) + b2)

    # net[4]: Linear, lane-dense padded output columns, bf16 writeback.
    out = jnp.dot(h2.astype(bf16), w3_ref[...], preferred_element_type=f32)
    out_ref[...] = (out + b3).astype(out_ref.dtype)


# ------------------------------- Wrapper -------------------------------------
def diffusion_mlp_forward(params, state, noisy_action, time_step):
    """state: (B, S), noisy_action: (B, A), time_step: (B,) -> (B, A) f32."""
    f32, bf16 = jnp.float32, jnp.bfloat16
    B, S = state.shape
    A = noisy_action.shape[1]
    time_dim, H = params["wt"].shape
    assert time_dim % 2 == 0 and time_dim >= 4, "time_dim must be even and >= 4"
    half = time_dim // 2

    # Sinusoidal time embedding in f32 (tiny; fuses into the concat below and
    # keeps full time_step precision out of the bf16 stream).
    freqs = jnp.exp(
        jnp.arange(half, dtype=f32) * -(math.log(10000.0) / (half - 1)))
    ang = time_step.astype(f32).reshape(B, 1) * freqs.reshape(1, half)
    emb = jnp.concatenate([jnp.sin(ang), jnp.cos(ang)], axis=-1)     # (B, T)

    # Single streamed operand: [emb | state | action] in bf16.
    x = jnp.concatenate([emb, state, noisy_action], axis=-1).astype(bf16)
    K = time_dim + S + A

    # bf16 MXU weights; lane-dense (>=128, x128) padded last layer.
    out_pad = max(128, _round_up(A, 128))
    wt = params["wt"].astype(bf16)
    w1sa = params["w1"][: S + A].astype(bf16)
    w1t = params["w1"][S + A:].astype(bf16)
    w2 = params["w2"].astype(bf16)
    w3, b3 = params["w3"], params["b3"]
    if out_pad != A:
        w3 = jnp.pad(w3, ((0, 0), (0, out_pad - A)))
        b3 = jnp.pad(b3, ((0, 0), (0, out_pad - A)))
    w3 = w3.astype(bf16)

    # Packed f32 bias slab (one input instead of four; a (1,H) bias pads to
    # (8,H) in VMEM anyway).
    C = max(H, out_pad)
    bias = jnp.zeros((8, C), f32)
    bias = bias.at[0, :H].set(params["bt"].reshape(H))
    bias = bias.at[1, :H].set(params["b1"].reshape(H))
    bias = bias.at[2, :H].set(params["b2"].reshape(H))
    bias = bias.at[3, :out_pad].set(b3.astype(f32).reshape(out_pad))

    # Batch tiling: per-step pipeline overhead (~0.35 us) dominates at small
    # tiles, so use big tiles; for mid-size B keep >= 2 grid steps so both v7x
    # TensorCores get work (no-op on single-TC v5e/v6e).
    if B <= 16:
        TB = B
    elif B <= 1024:
        TB = _round_up((B + 1) // 2, 8)
    else:
        TB = 512
    Bp = _round_up(B, TB)
    if Bp != B:
        x = jnp.pad(x, ((0, Bp - B), (0, 0)))
    grid = (Bp // TB,)

    const = lambda i: (0, 0)      # weights/biases: VMEM-resident, fetched once
    batched = lambda i: (i, 0)    # activations/output: streamed over batch

    # VMEM budgeting (matters on v7x at large H): single-buffer the
    # constant-index weight specs and raise the scoped VMEM limit only when
    # the resident weight set is large. Beyond ~60 MiB of weights the HxH
    # matmuls would need K-tiling (not needed at these sizes).
    weight_bytes = 2 * (time_dim * H + (S + A) * H + 2 * H * H + H * out_pad)
    single_buffer_weights = 2 * weight_bytes > 24 * (1 << 20)

    def const_spec(shape):
        if single_buffer_weights:
            return pl.BlockSpec(shape, const, pipeline_mode=pl.Buffered(1))
        return pl.BlockSpec(shape, const)

    in_specs = [
        pl.BlockSpec((TB, K), batched),        # [emb | state | action]
        const_spec((8, C)),                    # packed biases
        const_spec((time_dim, H)),             # wt
        const_spec((S + A, H)),                # w1sa
        const_spec((H, H)),                    # w1t
        const_spec((H, H)),                    # w2
        const_spec((H, out_pad)),              # w3 (padded)
    ]
    out_spec = pl.BlockSpec((TB, out_pad), batched)

    compiler_kwargs = dict(dimension_semantics=("parallel",))
    est_vmem = (weight_bytes * (1 if single_buffer_weights else 2)
                + 2 * (TB * K * 2 + TB * out_pad * 2) + (4 << 20))
    if est_vmem > 32 * (1 << 20):
        compiler_kwargs["vmem_limit_bytes"] = int(min(est_vmem, 60 * (1 << 20)))

    kernel = functools.partial(_diffusion_mlp_kernel, time_dim, H, out_pad)
    out = pl.pallas_call(
        kernel,
        out_shape=jax.ShapeDtypeStruct((Bp, out_pad), bf16),
        grid=grid,
        in_specs=in_specs,
        out_specs=out_spec,
        compiler_params=pltpu.CompilerParams(**compiler_kwargs),
    )(x, bias, wt, w1sa, w1t, w2, w3)

    return out[:B, :A].astype(f32)


# ----------------------------- Parameter init -------------------------------
def init_params(key, state_dim, action_dim, time_dim=16, hidden_dim=256):
    ks = jax.random.split(key, 4)

    def lin(k, fan_in, fan_out):
        # torch.nn.Linear default init: U(-1/sqrt(fan_in), 1/sqrt(fan_in))
        kw, kb = jax.random.split(k)
        bound = 1.0 / math.sqrt(fan_in)
        w = jax.random.uniform(kw, (fan_in, fan_out), jnp.float32, -bound, bound)
        b = jax.random.uniform(kb, (1, fan_out), jnp.float32, -bound, bound)
        return w, b

    wt, bt = lin(ks[0], time_dim, hidden_dim)
    w1, b1 = lin(ks[1], state_dim + action_dim + hidden_dim, hidden_dim)
    w2, b2 = lin(ks[2], hidden_dim, hidden_dim)
    w3, b3 = lin(ks[3], hidden_dim, action_dim)
    return {"wt": wt, "bt": bt, "w1": w1, "b1": b1,
            "w2": w2, "b2": b2, "w3": w3, "b3": b3}


# --------------------------- Pure-JAX reference ------------------------------
def _ref_forward(params, state, noisy_action, time_step):
    time_dim = params["wt"].shape[0]
    half = time_dim // 2
    freqs = jnp.exp(
        jnp.arange(half, dtype=jnp.float32) * -(math.log(10000.0) / (half - 1)))
    ang = time_step.astype(jnp.float32)[:, None] * freqs[None, :]
    emb = jnp.concatenate([jnp.sin(ang), jnp.cos(ang)], axis=-1)
    temb = jax.nn.relu(emb @ params["wt"] + params["bt"])
    x = jnp.concatenate([state, noisy_action, temb], axis=-1)
    h1 = jax.nn.relu(x @ params["w1"] + params["b1"])
    h2 = jnp.tanh(h1 @ params["w2"] + params["b2"])
    return h2 @ params["w3"] + params["b3"]


if __name__ == "__main__":
    key = jax.random.PRNGKey(0)
    k_params, k_s, k_a, k_t = jax.random.split(key, 4)

    B, state_dim, action_dim, time_dim, hidden_dim = 8, 16, 8, 16, 32

    params = init_params(k_params, state_dim, action_dim, time_dim, hidden_dim)
    state = jax.random.normal(k_s, (B, state_dim), jnp.float32)
    noisy_action = jax.random.normal(k_a, (B, action_dim), jnp.float32)
    time_step = jax.random.randint(k_t, (B,), 0, 100).astype(jnp.float32)

    fwd = jax.jit(diffusion_mlp_forward)
    out = jax.block_until_ready(fwd(params, state, noisy_action, time_step))

    ref = _ref_forward(params, state, noisy_action, time_step)
    assert out.shape == (B, action_dim)
    # bf16 MXU operands + bf16 output writeback -> loosened tolerance vs f32 ref.
    assert jnp.allclose(out, ref, atol=5e-2, rtol=5e-2), (
        float(jnp.max(jnp.abs(out - ref))))

    print("KERNEL_OK")
</pallas_src>

<mosaic_0001>
module attributes {stable_mosaic.version = 11 : i64} {
  func.func @_diffusion_mlp_kernel(%arg0: i32, %arg1: memref<8x40xbf16, #tpu.memory_space<vmem>>, %arg2: memref<8x128xf32, #tpu.memory_space<vmem>>, %arg3: memref<16x32xbf16, #tpu.memory_space<vmem>>, %arg4: memref<24x32xbf16, #tpu.memory_space<vmem>>, %arg5: memref<32x32xbf16, #tpu.memory_space<vmem>>, %arg6: memref<32x32xbf16, #tpu.memory_space<vmem>>, %arg7: memref<32x128xbf16, #tpu.memory_space<vmem>>, %arg8: memref<8x128xbf16, #tpu.memory_space<vmem>>) attributes {dimension_semantics = [#tpu.dimension_semantics<parallel>], iteration_bounds = array<i64: 1>, scalar_prefetch = 0 : i64, scratch_operands = 0 : i64, tpu.core_type = #tpu.core_type<tc>, window_params = [{transform_indices = @transform_0, window_bounds = array<i64: 8, 40>}, {pipeline_mode = #tpu.pipeline_mode<synchronous>, transform_indices = @transform_1, window_bounds = array<i64: 8, 128>}, {pipeline_mode = #tpu.pipeline_mode<synchronous>, transform_indices = @transform_2, window_bounds = array<i64: 16, 32>}, {pipeline_mode = #tpu.pipeline_mode<synchronous>, transform_indices = @transform_3, window_bounds = array<i64: 24, 32>}, {pipeline_mode = #tpu.pipeline_mode<synchronous>, transform_indices = @transform_4, window_bounds = array<i64: 32, 32>}, {pipeline_mode = #tpu.pipeline_mode<synchronous>, transform_indices = @transform_5, window_bounds = array<i64: 32, 32>}, {pipeline_mode = #tpu.pipeline_mode<synchronous>, transform_indices = @transform_6, window_bounds = array<i64: 32, 128>}, {transform_indices = @transform_7, window_bounds = array<i64: 8, 128>}]} {
    %c0 = arith.constant 0 : index
    %c0_0 = arith.constant 0 : index
    %0 = vector.load %arg1[%c0, %c0_0] : memref<8x40xbf16, #tpu.memory_space<vmem>>, vector<8x40xbf16>
    %1 = vector.extract_strided_slice %0 {offsets = [0, 0], sizes = [8, 16], strides = [1, 1]} : vector<8x40xbf16> to vector<8x16xbf16>
    %2 = vector.extract_strided_slice %0 {offsets = [0, 16], sizes = [8, 24], strides = [1, 1]} : vector<8x40xbf16> to vector<8x24xbf16>
    %c0_1 = arith.constant 0 : index
    %c0_2 = arith.constant 0 : index
    %3 = vector.load %arg2[%c0_1, %c0_2] : memref<8x128xf32, #tpu.memory_space<vmem>>, vector<1x32xf32>
    %c1 = arith.constant 1 : index
    %c0_3 = arith.constant 0 : index
    %4 = vector.load %arg2[%c1, %c0_3] : memref<8x128xf32, #tpu.memory_space<vmem>>, vector<1x32xf32>
    %c2 = arith.constant 2 : index
    %c0_4 = arith.constant 0 : index
    %5 = vector.load %arg2[%c2, %c0_4] : memref<8x128xf32, #tpu.memory_space<vmem>>, vector<1x32xf32>
    %c3 = arith.constant 3 : index
    %c0_5 = arith.constant 0 : index
    %6 = vector.load %arg2[%c3, %c0_5] : memref<8x128xf32, #tpu.memory_space<vmem>>, vector<1x128xf32>
    %c0_6 = arith.constant 0 : index
    %c0_7 = arith.constant 0 : index
    %7 = vector.load %arg3[%c0_6, %c0_7] : memref<16x32xbf16, #tpu.memory_space<vmem>>, vector<16x32xbf16>
    %cst = arith.constant dense<0.000000e+00> : vector<8x32xf32>
    %8 = tpu.matmul %1, %7, %cst {dimension_numbers = #tpu.dot_dimension_numbers<[1], [0], [0], [1], [0, 0, 1, 1], [], []>} : vector<8x16xbf16>, vector<16x32xbf16>, vector<8x32xf32> -> vector<8x32xf32>
    %9 = vector.broadcast %3 : vector<1x32xf32> to vector<8x32xf32>
    %10 = arith.addf %8, %9 : vector<8x32xf32>
    %cst_8 = arith.constant 0.000000e+00 : f32
    %11 = vector.broadcast %cst_8 : f32 to vector<8x32xf32>
    %12 = arith.maximumf %10, %11 : vector<8x32xf32>
    %c0_9 = arith.constant 0 : index
    %c0_10 = arith.constant 0 : index
    %13 = vector.load %arg4[%c0_9, %c0_10] : memref<24x32xbf16, #tpu.memory_space<vmem>>, vector<24x32xbf16>
    %cst_11 = arith.constant dense<0.000000e+00> : vector<8x32xf32>
    %14 = tpu.matmul %2, %13, %cst_11 {dimension_numbers = #tpu.dot_dimension_numbers<[1], [0], [0], [1], [0, 0, 1, 1], [], []>} : vector<8x24xbf16>, vector<24x32xbf16>, vector<8x32xf32> -> vector<8x32xf32>
    %15 = arith.truncf %12 : vector<8x32xf32> to vector<8x32xbf16>
    %c0_12 = arith.constant 0 : index
    %c0_13 = arith.constant 0 : index
    %16 = vector.load %arg5[%c0_12, %c0_13] : memref<32x32xbf16, #tpu.memory_space<vmem>>, vector<32x32xbf16>
    %cst_14 = arith.constant dense<0.000000e+00> : vector<8x32xf32>
    %17 = tpu.matmul %15, %16, %cst_14 {dimension_numbers = #tpu.dot_dimension_numbers<[1], [0], [0], [1], [0, 0, 1, 1], [], []>} : vector<8x32xbf16>, vector<32x32xbf16>, vector<8x32xf32> -> vector<8x32xf32>
    %18 = arith.addf %14, %17 : vector<8x32xf32>
    %19 = vector.broadcast %4 : vector<1x32xf32> to vector<8x32xf32>
    %20 = arith.addf %18, %19 : vector<8x32xf32>
    %cst_15 = arith.constant 0.000000e+00 : f32
    %21 = vector.broadcast %cst_15 : f32 to vector<8x32xf32>
    %22 = arith.maximumf %20, %21 : vector<8x32xf32>
    %23 = arith.truncf %22 : vector<8x32xf32> to vector<8x32xbf16>
    %c0_16 = arith.constant 0 : index
    %c0_17 = arith.constant 0 : index
    %24 = vector.load %arg6[%c0_16, %c0_17] : memref<32x32xbf16, #tpu.memory_space<vmem>>, vector<32x32xbf16>
    %cst_18 = arith.constant dense<0.000000e+00> : vector<8x32xf32>
    %25 = tpu.matmul %23, %24, %cst_18 {dimension_numbers = #tpu.dot_dimension_numbers<[1], [0], [0], [1], [0, 0, 1, 1], [], []>} : vector<8x32xbf16>, vector<32x32xbf16>, vector<8x32xf32> -> vector<8x32xf32>
    %26 = vector.broadcast %5 : vector<1x32xf32> to vector<8x32xf32>
    %27 = arith.addf %25, %26 : vector<8x32xf32>
    %28 = math.tanh %27 : vector<8x32xf32>
    %29 = arith.truncf %28 : vector<8x32xf32> to vector<8x32xbf16>
    %c0_19 = arith.constant 0 : index
    %c0_20 = arith.constant 0 : index
    %30 = vector.load %arg7[%c0_19, %c0_20] : memref<32x128xbf16, #tpu.memory_space<vmem>>, vector<32x128xbf16>
    %cst_21 = arith.constant dense<0.000000e+00> : vector<8x128xf32>
    %31 = tpu.matmul %29, %30, %cst_21 {dimension_numbers = #tpu.dot_dimension_numbers<[1], [0], [0], [1], [0, 0, 1, 1], [], []>} : vector<8x32xbf16>, vector<32x128xbf16>, vector<8x128xf32> -> vector<8x128xf32>
    %32 = vector.broadcast %6 : vector<1x128xf32> to vector<8x128xf32>
    %33 = arith.addf %31, %32 : vector<8x128xf32>
    %34 = arith.truncf %33 : vector<8x128xf32> to vector<8x128xbf16>
    %c0_22 = arith.constant 0 : index
    %c0_23 = arith.constant 0 : index
    %35 = vector.load %arg8[%c0_22, %c0_23] : memref<8x128xbf16, #tpu.memory_space<vmem>>, vector<8x128xbf16>
    tpu.vector_store %arg8[%c0_22, %c0_23], %34 {strides = array<i32>} : memref<8x128xbf16, #tpu.memory_space<vmem>>, vector<8x128xbf16>,
    return
  }
  func.func @transform_0(%arg0: i32) -> (i32, i32) {
    %c0_i32 = arith.constant 0 : i32
    %c0_i32_0 = arith.constant 0 : i32
    return %arg0, %c0_i32 : i32, i32
  }
  func.func @transform_1(%arg0: i32) -> (i32, i32) {
    %c0_i32 = arith.constant 0 : i32
    %c0_i32_0 = arith.constant 0 : i32
    %c0_i32_1 = arith.constant 0 : i32
    return %c0_i32, %c0_i32_0 : i32, i32
  }
  func.func @transform_2(%arg0: i32) -> (i32, i32) {
    %c0_i32 = arith.constant 0 : i32
    %c0_i32_0 = arith.constant 0 : i32
    %c0_i32_1 = arith.constant 0 : i32
    return %c0_i32, %c0_i32_0 : i32, i32
  }
  func.func @transform_3(%arg0: i32) -> (i32, i32) {
    %c0_i32 = arith.constant 0 : i32
    %c0_i32_0 = arith.constant 0 : i32
    %c0_i32_1 = arith.constant 0 : i32
    return %c0_i32, %c0_i32_0 : i32, i32
  }
  func.func @transform_4(%arg0: i32) -> (i32, i32) {
    %c0_i32 = arith.constant 0 : i32
    %c0_i32_0 = arith.constant 0 : i32
    %c0_i32_1 = arith.constant 0 : i32
    return %c0_i32, %c0_i32_0 : i32, i32
  }
  func.func @transform_5(%arg0: i32) -> (i32, i32) {
    %c0_i32 = arith.constant 0 : i32
    %c0_i32_0 = arith.constant 0 : i32
    %c0_i32_1 = arith.constant 0 : i32
    return %c0_i32, %c0_i32_0 : i32, i32
  }
  func.func @transform_6(%arg0: i32) -> (i32, i32) {
    %c0_i32 = arith.constant 0 : i32
    %c0_i32_0 = arith.constant 0 : i32
    %c0_i32_1 = arith.constant 0 : i32
    return %c0_i32, %c0_i32_0 : i32, i32
  }
  func.func @transform_7(%arg0: i32) -> (i32, i32) {
    %c0_i32 = arith.constant 0 : i32
    %c0_i32_0 = arith.constant 0 : i32
    return %arg0, %c0_i32 : i32, i32
  }
}

</mosaic_0001>

<bundles_post_ra>
// kernel: diffusion_mlp_forward.1
= control target key start
LH: loop header
LB: loop body
LE: loop exit
PB: predicated region body
PF: predicated region fallthrough
CT: control target
= control target key end

     0   :  { %v442_v0 = vmov 0.0   ;;  %vm443_vm0 = vmmov 0   ;;  %vm44_vm1 = vcmask 130048   ;;  %vm171_vm2 = vcmask 1043456   ;;  %s552_s2 = inlined_call_operand.vmem [shape: bf16[16,32], index: 2, kind: input, shape index: {}]   ;;  %s553_s0 = inlined_call_operand.vmem [shape: bf16[8,40], index: 0, kind: input, shape index: {}]   ;;  %s554_s3 = inlined_call_operand.vmem [shape: bf16[24,32], index: 3, kind: input, shape index: {}]   ;;  %s555_s4 = inlined_call_operand.vmem [shape: bf16[32,32], index: 4, kind: input, shape index: {}]   ;;  %s556_s1 = inlined_call_operand.vmem [shape: f32[8,128], index: 1, kind: input, shape index: {}]   ;;  %s557_s5 = inlined_call_operand.vmem [shape: bf16[32,32], index: 5, kind: input, shape index: {}]   ;;  %s558_s6 = inlined_call_operand.vmem [shape: bf16[32,128], index: 6, kind: input, shape index: {}]   ;;  %s559_s7 = inlined_call_operand.vmem [shape: bf16[8,128], index: 7, kind: output, shape index: {}]  }
   0x1   :  { %389 = vmatprep.subr.bf16.mxu0 %v442_v0  ;;  %v430_v1 = vld [vmem:[%s552_s2] sm:$0xff]   ;;  %391 = vmatprep.mubr.msk.bf16.mxu0 %vm443_vm0, %v442_v0  ;;  %s444_s2 = smov 112   ;;  %v434_v6 = vld [vmem:[%s554_s3 + $0x8] ss:$0 sps:$4 sm:$0xff]   ;;  %vm167_vm3 = vcmask 195584   ;;  %vm109_vm4 = vcmask 261120  }
   0x2   :  { %v27_v2 = vld [vmem:[%s553_s0] sm:$0xf]  ;;  %395 = vmatprep.subr.bf16.mxu1 %v442_v0  ;;  %399 = vmatprep.mubr.msk.bf16.mxu1 %vm443_vm0, %v442_v0  ;;  %v173_v7 = vsel %vm171_vm2, %v434_v6, 0  ;;  %v435_v8 = vld [vmem:[%s555_s4 + $0x8] sm:$0xff]  }
   0x3   :  { %390 = vmatpush3.bf16.msra.mxu0 %v430_v1  ;;  %v362_v3 = vcombine.low %v27_v2, %v27_v2  ;;  %v432_v4 = vld [vmem:[%s554_s3] sm:$0xff]   ;;  %v437_v19 = vld [vmem:[%s557_s5 + $0x8] sm:$0xff]  }
   0x4   :  { %403 = vmatprep.subr.bf16.mxu0 %v442_v0  ;;  %v433_v5 = vld [vmem:[%s555_s4] sm:$0xff]   ;;  %v439_v34 = vld [vmem:[%s558_s6 + $0x8] sm:$0xff]  }
   0x5   :  { %156 = vrot.lane.b32.xlu0 %v362_v3, %s444_s2  ;;  %396 = vmatpush3.bf16.msra.mxu1 %v433_v5  ;;  %v356_v10 = vld [vmem:[%s556_s1] ss:$0 sm:$0xff]  ;;  %v366_v24 = vld [vmem:[%s556_s1 + $0x1] ss:$0 sm:$0xff]  ;;  %v367_v35 = vld [vmem:[%s556_s1 + $0x2] ss:$0 sm:$0xff] }
   0x6   :  { %392 = vmatmul.mubr.msk.bf16.vlgmr.msra.gmra.mrb[0].mxu0 %vm44_vm1, %v27_v2  ;;  %397 = vmatprep.subr.bf16.mxu1 %v442_v0  ;;  %v436_v18 = vld [vmem:[%s557_s5] sm:$0xff]  }
   0x7   :  { %404 = vmatpush3.bf16.msra.mxu0 %v432_v4  ;;  %407 = vmatprep.mubr.msk.bf16.mxu0 %vm443_vm0, %v442_v0  ;;  %v438_v33 = vld [vmem:[%s558_s6] sm:$0xff]  }
   0x8   :  { %405 = vmatprep.subr.bf16.mxu0 %v442_v0  ;;  %v371_v43 = vld [vmem:[%s556_s1 + $0x3] ss:$0 sm:$0xff] }
   0x9   :  { %398 = vmatpush3.bf16.msra.mxu1 %v435_v8 }
   0xa   :  { %411 = vmatprep.subr.bf16.mxu1 %v442_v0 }
   0xb   :  { %406 = vmatpush3.bf16.msra.mxu0 %v173_v7 }
   0xc   :  { %419 = vmatprep.subr.bf16.mxu0 %v442_v0 }
  0x77   :  { %v157_v9 = vpop.permute.xlu0 %156 }
  0x78   :  { %408 = vmatmul.mubr.msk.bf16.vlgmr.msra.gmra.mrb[4].mxu0 %vm167_vm3, %v157_v9 }
  0x79   :  { %423 = vmatprep.mubr.msk.bf16.mxu0 %vm443_vm0, %v442_v0  ;;  %420 = vmatpush3.bf16.msra.mxu0 %v438_v33 }
  0x7a   :  { %421 = vmatprep.subr.bf16.mxu0 %v442_v0 }
  0x7d   :  { %422 = vmatpush3.bf16.msra.mxu0 %v439_v34 }
  0xd9   :  { %v82_v11 = vpop.f32.mrb[0].mxu0 }
  0xda   :  { %v83_v12 = vadd.f32 %v356_v10, %v82_v11  ;;  %v393_v13 = vpop.f32.mrb[1].mxu0 }
  0xdb   :  { %v85_v14 = vpop.f32.mrb[2].mxu0 }
  0xdc   :  { %v88_v15 = vmax.f32 %v83_v12, 0.0  ;;  %v394_v16 = vpop.f32.mrb[3].mxu0 }
  0xde   :  { %v92_v17 = vpack.c.bf16 %v88_v15, %v88_v15 }
  0xe0   :  { %400 = vmatmul.mubr.msk.bf16.vlgmr.msra.gmra.mrb[0].mxu1 %vm109_vm4, %v92_v17 }
  0xe1   :  { %415 = vmatprep.mubr.msk.bf16.mxu1 %vm443_vm0, %v442_v0  ;;  %412 = vmatpush3.bf16.msra.mxu1 %v436_v18 }
  0xe2   :  { %413 = vmatprep.subr.bf16.mxu1 %v442_v0 }
  0xe5   :  { %414 = vmatpush3.bf16.msra.mxu1 %v437_v19 }
 0x14b   :  { %v209_v20 = vpop.f32.mrb[4].mxu0 }
 0x14c   :  { %v409_v21 = vpop.f32.mrb[5].mxu0 }
 0x14d   :  { %v212_v22 = vpop.f32.mrb[6].mxu0 }
 0x14e   :  { %v410_v23 = vpop.f32.mrb[7].mxu0 }
 0x1b3   :  { %v147_v25 = vpop.f32.mrb[0].mxu1 }
 0x1b4   :  { %v210_v26 = vadd.f32 %v209_v20, %v147_v25  ;;  %v401_v27 = vpop.f32.mrb[1].mxu1 }
 0x1b5   :  { %v150_v28 = vpop.f32.mrb[2].mxu1 }
 0x1b6   :  { %v219_v29 = vadd.f32 %v366_v24, %v210_v26  ;;  %v402_v30 = vpop.f32.mrb[3].mxu1 }
 0x1b8   :  { %v220_v31 = vmax.f32 %v219_v29, 0.0 }
 0x1ba   :  { %v221_v32 = vpack.c.bf16 %v220_v31, %v220_v31 }
 0x1bc   :  { %416 = vmatmul.mubr.msk.bf16.vlgmr.msra.gmra.mrb[4].mxu1 %vm109_vm4, %v221_v32 }
 0x28f   :  { %v279_v36 = vpop.f32.mrb[4].mxu1 }
 0x290   :  { %v280_v37 = vadd.f32 %v367_v35, %v279_v36  ;;  %v417_v38 = vpop.f32.mrb[5].mxu1 }
 0x291   :  { %v282_v39 = vpop.f32.mrb[6].mxu1 }
 0x292   :  { %440 = vtanh.f32 %v280_v37  ;;  %v418_v40 = vpop.f32.mrb[7].mxu1 }
 0x29c   :  { %v441_v41 = vpop.eup %440 }
 0x29d   :  { %v286_v42 = vpack.c.bf16 %v441_v41, %v441_v41 }
 0x29f   :  { %424 = vmatmul.mubr.msk.bf16.vlgmr.msra.gmra.mrb[8].mxu0 %vm109_vm4, %v286_v42 }
 0x372   :  { %v344_v44 = vpop.f32.mrb[8].mxu0 }
 0x373   :  { %v345_v45 = vadd.f32 %v371_v43, %v344_v44  ;;  %v425_v46 = vpop.f32.mrb[9].mxu0 }
 0x374   :  { %v347_v47 = vpop.f32.mrb[10].mxu0 }
 0x375   :  { %v350_v48 = vpack.c.bf16 %v345_v45, %v345_v45  ;;  %v426_v49 = vpop.f32.mrb[11].mxu0 }
 0x377   :  { %351 = vst [vmem:[%s559_s7] sm:$0xf] %v350_v48 }

</bundles_post_ra>
